<compile_context>
chip_gen: v5e
topology: v5e:2x2
jax: 0.10.0
libtpu: 0.0.40
codegen_flags: <defaults>
</compile_context>

<pallas_src>
import math

import jax
import jax.numpy as jnp
from jax import lax
from jax.experimental import pallas as pl
from jax.experimental.pallas import tpu as pltpu


_INV_SQRT2 = 1.0 / math.sqrt(2.0)


def _round_up(x: int, m: int) -> int:
    return (x + m - 1) // m * m


def _pick_tile(dim: int, candidates=(512, 256, 128)) -> int:
    for c in candidates:
        if dim % c == 0:
            return c
    return dim  # dim is a multiple of 128 by construction


def _bias_gelu_f32(z, b):
    """Bias add + exact (erf) GELU in f32 (matches PyTorch ACT2FN['gelu'])."""
    z = z + b.astype(jnp.float32)
    return 0.5 * z * (1.0 + lax.erf(z * _INV_SQRT2))


def _pooler_kernel_fullk(x_ref, w_ref, b_ref, o_ref):
    """One (tm, tn) output tile, full-K panel: matmul + bias + GELU fused."""
    z = jnp.dot(x_ref[...], w_ref[...], preferred_element_type=jnp.float32)
    o_ref[...] = _bias_gelu_f32(z, b_ref[...]).astype(o_ref.dtype)


def _pooler_kernel_ksplit(x_ref, w_ref, b_ref, o_ref, acc_ref):
    """One (tm, tn) output tile; grid axis 2 is the K reduction (f32 VMEM accumulator)."""
    k = pl.program_id(2)

    @pl.when(k == 0)
    def _():
        acc_ref[...] = jnp.zeros_like(acc_ref)

    acc_ref[...] += jnp.dot(
        x_ref[...], w_ref[...], preferred_element_type=jnp.float32
    )

    @pl.when(k == pl.num_programs(2) - 1)
    def _():
        # Bias + GELU once per output tile (not per K step), then lane-dense store.
        o_ref[...] = _bias_gelu_f32(acc_ref[...], b_ref[...]).astype(o_ref.dtype)


def _dense_gelu(x, w_t, b, *, out_dtype, max_tk=2048, max_tn=512):
    """pooled = gelu(x @ w_t + b)   with x:[B,K], w_t:[K,N], b:[N]."""
    B, K = x.shape
    K2, N = w_t.shape
    assert K == K2 and b.shape == (N,)

    # Tile / pad to (8, 128)-friendly multiples; zero padding does not change the matmul.
    tm = min(128, _round_up(max(B, 1), 8))      # small batches -> small M tile (no 128 pad)
    M_pad = _round_up(max(B, 1), tm)
    K_pad = _round_up(K, 128)
    N_pad = _round_up(N, 128)

    tn = N_pad if N_pad <= max_tn else _pick_tile(N_pad)          # lane-dense output tiles
    tk = K_pad if K_pad <= max_tk else _pick_tile(K_pad)          # full K panel when it fits

    x_p = jnp.pad(x, ((0, M_pad - B), (0, K_pad - K)))
    w_p = jnp.pad(w_t, ((0, K_pad - K), (0, N_pad - N)))
    b_p = jnp.pad(b, (0, N_pad - N)).reshape(1, N_pad)

    n_k = K_pad // tk

    if n_k == 1:
        # Fused single-shot path: no reduction grid axis, no scratch accumulator.
        out = pl.pallas_call(
            _pooler_kernel_fullk,
            out_shape=jax.ShapeDtypeStruct((M_pad, N_pad), out_dtype),
            grid_spec=pltpu.PrefetchScalarGridSpec(
                num_scalar_prefetch=0,
                grid=(M_pad // tm, N_pad // tn),
                in_specs=[
                    pl.BlockSpec((tm, K_pad), lambda i, j: (i, 0)),   # activation panel
                    pl.BlockSpec((K_pad, tn), lambda i, j: (0, j)),   # weight panel
                    pl.BlockSpec((1, tn), lambda i, j: (0, j)),       # bias tile
                ],
                out_specs=pl.BlockSpec((tm, tn), lambda i, j: (i, j)),
            ),
            compiler_params=pltpu.CompilerParams(
                dimension_semantics=("parallel", "parallel"),
            ),
        )(x_p, w_p, b_p)
    else:
        # K-split fallback for very large hidden sizes.
        out = pl.pallas_call(
            _pooler_kernel_ksplit,
            out_shape=jax.ShapeDtypeStruct((M_pad, N_pad), out_dtype),
            grid_spec=pltpu.PrefetchScalarGridSpec(
                num_scalar_prefetch=0,
                grid=(M_pad // tm, N_pad // tn, n_k),
                in_specs=[
                    pl.BlockSpec((tm, tk), lambda i, j, k: (i, k)),   # activation tile
                    pl.BlockSpec((tk, tn), lambda i, j, k: (k, j)),   # weight tile
                    pl.BlockSpec((1, tn), lambda i, j, k: (0, j)),    # bias tile
                ],
                out_specs=pl.BlockSpec((tm, tn), lambda i, j, k: (i, j)),
                scratch_shapes=[pltpu.VMEM((tm, tn), jnp.float32)],
            ),
            compiler_params=pltpu.CompilerParams(
                dimension_semantics=("parallel", "parallel", "arbitrary"),
            ),
        )(x_p, w_p, b_p)

    return out[:B, :N]


def context_pooler_forward(hidden_states, weight, bias):
    """ContextPooler.forward (inference path).

    hidden_states: [B, S, H]
    weight:        [H, H]  (PyTorch nn.Linear convention: [out, in])
    bias:          [H]
    """
    # Slice the CLS token in the wrapper so the kernel never streams the full
    # [B, S, H] tensor (saves ~S x HBM traffic for this mem-bound epilogue op).
    cls = hidden_states[:, 0, :]                 # [B, H]
    # StableDropout is identity at inference -> no in-kernel PRNG/mask.
    # TODO(synk): training-mode StableDropout (scaled random mask) not implemented.
    w_t = weight.T                               # [in, out]
    return _dense_gelu(cls, w_t, bias, out_dtype=hidden_states.dtype)


if __name__ == "__main__":
    # Small but tile-aligned shapes; H=384 -> single fused-K grid step in the default path.
    B, S, H = 2, 8, 384
    key = jax.random.PRNGKey(0)
    k1, k2, k3 = jax.random.split(key, 3)
    hidden = jax.random.normal(k1, (B, S, H), dtype=jnp.float32)
    weight = jax.random.normal(k2, (H, H), dtype=jnp.float32) * (1.0 / math.sqrt(H))
    bias = jax.random.normal(k3, (H,), dtype=jnp.float32) * 0.1

    # Reference: exact (erf) GELU, matching PyTorch ACT2FN['gelu'].
    ref = jax.nn.gelu(hidden[:, 0, :] @ weight.T + bias, approximate=False)

    # Default (fused single-K) path.
    out = jax.block_until_ready(context_pooler_forward(hidden, weight, bias))
    assert out.shape == (B, H), out.shape
    assert jnp.allclose(out, ref, atol=1e-3, rtol=1e-3), float(
        jnp.max(jnp.abs(out - ref))
    )

    # Also exercise the K-split fallback kernel (forced small K panel) at the same shapes.
    out_ks = jax.block_until_ready(
        _dense_gelu(hidden[:, 0, :], weight.T, bias,
                    out_dtype=hidden.dtype, max_tk=128)
    )
    assert jnp.allclose(out_ks, ref, atol=1e-3, rtol=1e-3), float(
        jnp.max(jnp.abs(out_ks - ref))
    )

    print("KERNEL_OK")
</pallas_src>

<mosaic_0001>
module attributes {stable_mosaic.version = 11 : i64} {
  func.func @_pooler_kernel_fullk(%arg0: i32, %arg1: i32, %arg2: memref<8x384xf32, #tpu.memory_space<vmem>>, %arg3: memref<384x384xf32, #tpu.memory_space<vmem>>, %arg4: memref<1x384xf32, #tpu.memory_space<vmem>>, %arg5: memref<8x384xf32, #tpu.memory_space<vmem>>) attributes {dimension_semantics = [#tpu.dimension_semantics<parallel>, #tpu.dimension_semantics<parallel>], iteration_bounds = array<i64: 1, 1>, scalar_prefetch = 0 : i64, scratch_operands = 0 : i64, tpu.core_type = #tpu.core_type<tc>, window_params = [{transform_indices = @transform_0, window_bounds = array<i64: 8, 384>}, {transform_indices = @transform_1, window_bounds = array<i64: 384, 384>}, {transform_indices = @transform_2, window_bounds = array<i64: 1, 384>}, {transform_indices = @transform_3, window_bounds = array<i64: 8, 384>}]} {
    %c0 = arith.constant 0 : index
    %c0_0 = arith.constant 0 : index
    %0 = vector.load %arg2[%c0, %c0_0] : memref<8x384xf32, #tpu.memory_space<vmem>>, vector<8x384xf32>
    %c0_1 = arith.constant 0 : index
    %c0_2 = arith.constant 0 : index
    %1 = vector.load %arg3[%c0_1, %c0_2] : memref<384x384xf32, #tpu.memory_space<vmem>>, vector<384x384xf32>
    %cst = arith.constant dense<0.000000e+00> : vector<8x384xf32>
    %2 = tpu.matmul %0, %1, %cst {dimension_numbers = #tpu.dot_dimension_numbers<[1], [0], [0], [1], [0, 0, 1, 1], [], []>} : vector<8x384xf32>, vector<384x384xf32>, vector<8x384xf32> -> vector<8x384xf32>
    %c0_3 = arith.constant 0 : index
    %c0_4 = arith.constant 0 : index
    %3 = vector.load %arg4[%c0_3, %c0_4] : memref<1x384xf32, #tpu.memory_space<vmem>>, vector<1x384xf32>
    %4 = vector.broadcast %3 : vector<1x384xf32> to vector<8x384xf32>
    %5 = arith.addf %2, %4 : vector<8x384xf32>
    %cst_5 = arith.constant 5.000000e-01 : f32
    %6 = vector.broadcast %cst_5 : f32 to vector<8x384xf32>
    %7 = arith.mulf %6, %5 : vector<8x384xf32>
    %cst_6 = arith.constant 0.707106769 : f32
    %8 = vector.broadcast %cst_6 : f32 to vector<8x384xf32>
    %9 = arith.mulf %5, %8 : vector<8x384xf32>
    %10 = math.erf %9 : vector<8x384xf32>
    %cst_7 = arith.constant 1.000000e+00 : f32
    %11 = vector.broadcast %cst_7 : f32 to vector<8x384xf32>
    %12 = arith.addf %11, %10 : vector<8x384xf32>
    %13 = arith.mulf %7, %12 : vector<8x384xf32>
    %c0_8 = arith.constant 0 : index
    %c0_9 = arith.constant 0 : index
    %14 = vector.load %arg5[%c0_8, %c0_9] : memref<8x384xf32, #tpu.memory_space<vmem>>, vector<8x384xf32>
    tpu.vector_store %arg5[%c0_8, %c0_9], %13 {strides = array<i32>} : memref<8x384xf32, #tpu.memory_space<vmem>>, vector<8x384xf32>,
    return
  }
  func.func @transform_0(%arg0: i32, %arg1: i32) -> (i32, i32) {
    %c0_i32 = arith.constant 0 : i32
    %c0_i32_0 = arith.constant 0 : i32
    return %arg0, %c0_i32 : i32, i32
  }
  func.func @transform_1(%arg0: i32, %arg1: i32) -> (i32, i32) {
    %c0_i32 = arith.constant 0 : i32
    %c0_i32_0 = arith.constant 0 : i32
    return %c0_i32, %arg1 : i32, i32
  }
  func.func @transform_2(%arg0: i32, %arg1: i32) -> (i32, i32) {
    %c0_i32 = arith.constant 0 : i32
    %c0_i32_0 = arith.constant 0 : i32
    return %c0_i32, %arg1 : i32, i32
  }
  func.func @transform_3(%arg0: i32, %arg1: i32) -> (i32, i32) {
    %c0_i32 = arith.constant 0 : i32
    return %arg0, %arg1 : i32, i32
  }
}

</mosaic_0001>

<bundles_post_ra>
// kernel: tpu_custom_call.1
= control target key start
LH: loop header
LB: loop body
LE: loop exit
PB: predicated region body
PF: predicated region fallthrough
CT: control target
= control target key end

     0   :  { %8 = vsyncpa [#allocation3], 0  ;;  %s738_s0 = inlined_call_operand.hbm [shape: f32[8,384], index: 0, kind: input, shape index: {}]   ;;  %s739_s1 = inlined_call_operand.hbm [shape: f32[384,384], index: 1, kind: input, shape index: {}]   ;;  %s740_s2 = inlined_call_operand.hbm [shape: f32[1,384], index: 2, kind: input, shape index: {}]   ;;  %s741_s3 = inlined_call_operand.hbm [shape: f32[8,384], index: 3, kind: output, shape index: {}]  }
   0x1   :  { %9 = vsyncpa [#allocation6], 0  ;;  %s26_s14 = sshll.u32 %s739_s1, 4  ;;  %s27_s14 = int_to_ptr.hbm [resolvable:$true] %s26_s14 }
   0x2   :  { %10 = vsyncpa [#allocation4], 0  ;;  %s663_s15 = smov [#allocation5]   ;;  %s16_s19 = sshll.u32 %s738_s0, 4  ;;  %s17_s19 = int_to_ptr.hbm [resolvable:$true] %s16_s19 }
   0x3   :  { %s28_s16 = sshll.u32 %s663_s15, 4  ;;  %s664_s20 = smov 384   ;;  %s29_s16 = int_to_ptr.vmem [resolvable:$true] %s28_s16 }
   0x4   :  { %s665_s21 = smov 24   ;;  %s666_s22 = smov [#allocation2]  }
   0x5   :  { %34 = dma.hbm_to_vmem [thread:$0]  %s27_s14, 18432, %s29_s16, [#allocation6], %s664_s20, %s664_s20, %s665_s21  }
   0x6   :  { %s18_s23 = sshll.u32 %s666_s22, 4  ;;  %s40_s26 = sshll.u32 %s740_s2, 4  ;;  %s19_s23 = int_to_ptr.vmem [resolvable:$true] %s18_s23  ;;  %s41_s26 = int_to_ptr.hbm [resolvable:$true] %s40_s26 }
   0x7   :  { %21 = dma.hbm_to_vmem [thread:$0]  %s17_s19, 384, %s19_s23, [#allocation3]  }
   0x8   :  { %s667_s1 = smov [#allocation7]  }
   0x9   :  { %s42_s27 = sshll.u32 %s667_s1, 4  ;;  %s43_s27 = int_to_ptr.vmem [resolvable:$true] %s42_s27 }
   0xa   :  { %45 = dma.hbm_to_vmem [thread:$0]  %s41_s26, 48, %s43_s27, [#allocation6]  }
   0xb   :  { %657 = dma.done.wait [#allocation3], 384  }
   0xc   :  { %658 = vsyncadd [#allocation3], 4294966912 }
   0xd   :  { %659 = dma.done.wait [#allocation6], 18480  }
   0xe   :  { %660 = vsyncadd [#allocation6], 4294948816  ;;  %v106_v0 = vld [vmem:[#allocation5 + $0x168] sm:$0xff]  ;;  %v103_v2 = vld [vmem:[#allocation5 + $0x150] sm:$0xff]  ;;  %s668_s0 = smov [#allocation8]   ;;  %s535_s30 = sshll.u32 %s741_s3, 4  ;;  %s536_s30 = int_to_ptr.hbm [resolvable:$true] %s535_s30 }
   0xf   :  { %v202_v1 = vld [vmem:[#allocation5 + $0x468] sm:$0xff]  ;;  %213 = vmatpush.msra.mxu0 %v106_v0  ;;  %v199_v4 = vld [vmem:[#allocation5 + $0x450] sm:$0xff]  ;;  %v100_v5 = vld [vmem:[#allocation5 + $0x138] sm:$0xff]  ;;  %s533_s2 = sshll.u32 %s668_s0, 4  ;;  %s534_s2 = int_to_ptr.vmem [resolvable:$true] %s533_s2 }
  0x10   :  { %253 = vmatpush.msra.mxu2 %v202_v1  ;;  %v154_v3 = vld [vmem:[#allocation5 + $0x2e8] sm:$0xff]  ;;  %v151_v6 = vld [vmem:[#allocation5 + $0x2d0] sm:$0xff]  ;;  %v196_v7 = vld [vmem:[#allocation5 + $0x438] sm:$0xff] }
  0x11   :  { %233 = vmatpush.msra.mxu1 %v154_v3  ;;  %214 = vmatpush.msra.mxu0 %v103_v2  ;;  %v148_v8 = vld [vmem:[#allocation5 + $0x2b8] sm:$0xff]  ;;  %v97_v9 = vld [vmem:[#allocation5 + $0x120] sm:$0xff]  ;;  %v94_v12 = vld [vmem:[#allocation5 + $0x108] sm:$0xff] }
  0x12   :  { %254 = vmatpush.msra.mxu2 %v199_v4  ;;  %v193_v10 = vld [vmem:[#allocation5 + $0x420] sm:$0xff]  ;;  %v190_v13 = vld [vmem:[#allocation5 + $0x408] sm:$0xff]  ;;  %v91_v15 = vld [vmem:[#allocation5 + $0xf0] sm:$0xff] }
  0x13   :  { %234 = vmatpush.msra.mxu1 %v151_v6  ;;  %215 = vmatpush.msra.mxu0 %v100_v5  ;;  %v145_v11 = vld [vmem:[#allocation5 + $0x2a0] sm:$0xff]  ;;  %v142_v14 = vld [vmem:[#allocation5 + $0x288] sm:$0xff]  ;;  %v187_v16 = vld [vmem:[#allocation5 + $0x3f0] sm:$0xff] }
  0x14   :  { %255 = vmatpush.msra.mxu2 %v196_v7  ;;  %v139_v17 = vld [vmem:[#allocation5 + $0x270] sm:$0xff]  ;;  %v88_v18 = vld [vmem:[#allocation5 + $0xd8] sm:$0xff]  ;;  %v85_v22 = vld [vmem:[#allocation5 + $0xc0] sm:$0xff] }
  0x15   :  { %235 = vmatpush.msra.mxu1 %v148_v8  ;;  %216 = vmatpush.msra.mxu0 %v97_v9  ;;  %v184_v19 = vld [vmem:[#allocation5 + $0x3d8] sm:$0xff]  ;;  %v107_v21 = vld [vmem:[#allocation5 + $0x170] sm:$0xff]  ;;  %v181_v23 = vld [vmem:[#allocation5 + $0x3c0] sm:$0xff] }
  0x16   :  { %256 = vmatpush.msra.mxu2 %v193_v10  ;;  %v136_v20 = vld [vmem:[#allocation5 + $0x258] sm:$0xff]  ;;  %273 = vmatpush.msra.mxu3 %v107_v21  ;;  %v133_v24 = vld [vmem:[#allocation5 + $0x240] sm:$0xff]  ;;  %v82_v26 = vld [vmem:[#allocation5 + $0xa8] sm:$0xff] }
  0x17   :  { %236 = vmatpush.msra.mxu1 %v145_v11  ;;  %217 = vmatpush.msra.mxu0 %v94_v12  ;;  %v104_v25 = vld [vmem:[#allocation5 + $0x158] sm:$0xff]  ;;  %v178_v27 = vld [vmem:[#allocation5 + $0x3a8] sm:$0xff]  ;;  %v101_v28 = vld [vmem:[#allocation5 + $0x140] sm:$0xff] }
  0x18   :  { %257 = vmatpush.msra.mxu2 %v190_v13  ;;  %274 = vmatpush.msra.mxu3 %v104_v25  ;;  %v130_v29 = vld [vmem:[#allocation5 + $0x228] sm:$0xff]  ;;  %v79_v31 = vld [vmem:[#allocation5 + $0x90] sm:$0xff]  ;;  %v76_v35 = vld [vmem:[#allocation5 + $0x78] sm:$0xff] }
  0x19   :  { %237 = vmatpush.msra.mxu1 %v142_v14  ;;  %218 = vmatpush.msra.mxu0 %v91_v15  ;;  %v98_v30 = vld [vmem:[#allocation5 + $0x128] sm:$0xff]  ;;  %v175_v32 = vld [vmem:[#allocation5 + $0x390] sm:$0xff]  ;;  %v172_v36 = vld [vmem:[#allocation5 + $0x378] sm:$0xff] }
  0x1a   :  { %258 = vmatpush.msra.mxu2 %v187_v16  ;;  %275 = vmatpush.msra.mxu3 %v101_v28  ;;  %v127_v33 = vld [vmem:[#allocation5 + $0x210] sm:$0xff]  ;;  %v124_v37 = vld [vmem:[#allocation5 + $0x1f8] sm:$0xff]  ;;  %v73_v39 = vld [vmem:[#allocation5 + $0x60] sm:$0xff] }
  0x1b   :  { %238 = vmatpush.msra.mxu1 %v139_v17  ;;  %219 = vmatpush.msra.mxu0 %v88_v18  ;;  %v95_v34 = vld [vmem:[#allocation5 + $0x110] sm:$0xff]  ;;  %v92_v38 = vld [vmem:[#allocation5 + $0xf8] sm:$0xff]  ;;  %v169_v40 = vld [vmem:[#allocation5 + $0x360] sm:$0xff] }
  0x1c   :  { %259 = vmatpush.msra.mxu2 %v184_v19  ;;  %276 = vmatpush.msra.mxu3 %v98_v30  ;;  %v121_v41 = vld [vmem:[#allocation5 + $0x1e0] sm:$0xff]  ;;  %v70_v43 = vld [vmem:[#allocation5 + $0x48] sm:$0xff]  ;;  %v67_v47 = vld [vmem:[#allocation5 + $0x30] sm:$0xff] }
  0x1d   :  { %239 = vmatpush.msra.mxu1 %v136_v20  ;;  %220 = vmatpush.msra.mxu0 %v85_v22  ;;  %v89_v42 = vld [vmem:[#allocation5 + $0xe0] sm:$0xff]  ;;  %v166_v44 = vld [vmem:[#allocation5 + $0x348] sm:$0xff]  ;;  %v163_v48 = vld [vmem:[#allocation5 + $0x330] sm:$0xff] }
  0x1e   :  { %260 = vmatpush.msra.mxu2 %v181_v23  ;;  %277 = vmatpush.msra.mxu3 %v95_v34  ;;  %v118_v45 = vld [vmem:[#allocation5 + $0x1c8] sm:$0xff]  ;;  %v115_v49 = vld [vmem:[#allocation5 + $0x1b0] sm:$0xff]  ;;  %v64_v51 = vld [vmem:[#allocation5 + $0x18] sm:$0xff] }
  0x1f   :  { %240 = vmatpush.msra.mxu1 %v133_v24  ;;  %221 = vmatpush.msra.mxu0 %v82_v26  ;;  %v86_v46 = vld [vmem:[#allocation5 + $0xc8] sm:$0xff]  ;;  %v83_v50 = vld [vmem:[#allocation5 + $0xb0] sm:$0xff]  ;;  %v160_v52 = vld [vmem:[#allocation5 + $0x318] sm:$0xff] }
  0x20   :  { %261 = vmatpush.msra.mxu2 %v178_v27  ;;  %278 = vmatpush.msra.mxu3 %v92_v38  ;;  %v112_v53 = vld [vmem:[#allocation5 + $0x198] sm:$0xff]  ;;  %v61_v55 = vld [vmem:[#allocation5] sm:$0xff]  ;;  %v155_v58 = vld [vmem:[#allocation5 + $0x2f0] sm:$0xff] }
  0x21   :  { %241 = vmatpush.msra.mxu1 %v130_v29  ;;  %222 = vmatpush.msra.mxu0 %v79_v31  ;;  %v80_v54 = vld [vmem:[#allocation5 + $0x98] sm:$0xff]  ;;  %v157_v56 = vld [vmem:[#allocation5 + $0x300] sm:$0xff]  ;;  %v700_v60 = vld [vmem:[#allocation2] sm:$0xff] }
  0x22   :  { %262 = vmatpush.msra.mxu2 %v175_v32  ;;  %279 = vmatpush.msra.mxu3 %v89_v42  ;;  %v698_v57 = vld [vmem:[#allocation2 + $0x10] sm:$0xff]  ;;  %v109_v59 = vld [vmem:[#allocation5 + $0x180] sm:$0xff]  ;;  %v203_v62 = vld [vmem:[#allocation5 + $0x470] sm:$0xff] }
  0x23   :  { %242 = vmatpush.msra.mxu1 %v127_v33  ;;  %223 = vmatpush.msra.mxu0 %v76_v35  ;;  %v152_v61 = vld [vmem:[#allocation5 + $0x2d8] sm:$0xff]  ;;  %v703_v63 = vld [vmem:[#allocation2 + $0x8] sm:$0xff]  ;;  %v77_v0 = vld [vmem:[#allocation5 + $0x80] sm:$0xff] }
  0x24   :  { %263 = vmatpush.msra.mxu2 %v172_v36  ;;  %280 = vmatpush.msra.mxu3 %v86_v46  ;;  %v149_v1 = vld [vmem:[#allocation5 + $0x2c0] sm:$0xff]  ;;  %v200_v2 = vld [vmem:[#allocation5 + $0x458] sm:$0xff]  ;;  %v74_v3 = vld [vmem:[#allocation5 + $0x68] sm:$0xff] }
  0x25   :  { %243 = vmatpush.msra.mxu1 %v124_v37  ;;  %224 = vmatpush.msra.mxu0 %v73_v39  ;;  %v108_v4 = vld [vmem:[#allocation5 + $0x178] sm:$0xff]  ;;  %v146_v5 = vld [vmem:[#allocation5 + $0x2a8] sm:$0xff]  ;;  %v197_v6 = vld [vmem:[#allocation5 + $0x440] sm:$0xff] }
  0x26   :  { %264 = vmatpush.msra.mxu2 %v169_v40  ;;  %281 = vmatpush.msra.mxu3 %v83_v50  ;;  %v71_v7 = vld [vmem:[#allocation5 + $0x50] sm:$0xff]  ;;  %v105_v8 = vld [vmem:[#allocation5 + $0x160] sm:$0xff]  ;;  %v194_v10 = vld [vmem:[#allocation5 + $0x428] sm:$0xff] }
  0x27   :  { %244 = vmatpush.msra.mxu1 %v121_v41  ;;  %225 = vmatpush.msra.mxu0 %v70_v43  ;;  %v143_v9 = vld [vmem:[#allocation5 + $0x290] sm:$0xff]  ;;  %v68_v11 = vld [vmem:[#allocation5 + $0x38] sm:$0xff]  ;;  %v102_v12 = vld [vmem:[#allocation5 + $0x148] sm:$0xff] }
  0x28   :  { %265 = vmatpush.msra.mxu2 %v166_v44  ;;  %282 = vmatpush.msra.mxu3 %v80_v54  ;;  %v140_v13 = vld [vmem:[#allocation5 + $0x278] sm:$0xff]  ;;  %v191_v14 = vld [vmem:[#allocation5 + $0x410] sm:$0xff]  ;;  %v65_v15 = vld [vmem:[#allocation5 + $0x20] sm:$0xff] }
  0x29   :  { %245 = vmatpush.msra.mxu1 %v118_v45  ;;  %226 = vmatpush.msra.mxu0 %v67_v47  ;;  %v99_v16 = vld [vmem:[#allocation5 + $0x130] sm:$0xff]  ;;  %v137_v17 = vld [vmem:[#allocation5 + $0x260] sm:$0xff]  ;;  %v188_v18 = vld [vmem:[#allocation5 + $0x3f8] sm:$0xff] }
  0x2a   :  { %266 = vmatpush.msra.mxu2 %v163_v48  ;;  %283 = vmatpush.msra.mxu3 %v77_v0  ;;  %v62_v19 = vld [vmem:[#allocation5 + $0x8] sm:$0xff]  ;;  %v96_v20 = vld [vmem:[#allocation5 + $0x118] sm:$0xff]  ;;  %v185_v22 = vld [vmem:[#allocation5 + $0x3e0] sm:$0xff] }
  0x2b   :  { %246 = vmatpush.msra.mxu1 %v115_v49  ;;  %227 = vmatpush.msra.mxu0 %v64_v51  ;;  %v134_v21 = vld [vmem:[#allocation5 + $0x248] sm:$0xff]  ;;  %v93_v23 = vld [vmem:[#allocation5 + $0x100] sm:$0xff]  ;;  %v131_v24 = vld [vmem:[#allocation5 + $0x230] sm:$0xff] }
  0x2c   :  { %267 = vmatpush.msra.mxu2 %v160_v52  ;;  %284 = vmatpush.msra.mxu3 %v74_v3  ;;  %v182_v25 = vld [vmem:[#allocation5 + $0x3c8] sm:$0xff]  ;;  %v156_v26 = vld [vmem:[#allocation5 + $0x2f8] sm:$0xff]  ;;  %v179_v29 = vld [vmem:[#allocation5 + $0x3b0] sm:$0xff] }
  0x2d   :  { %247 = vmatpush.msra.mxu1 %v112_v53  ;;  %228 = vmatpush.msra.mxu0 %v61_v55  ;;  %v90_v27 = vld [vmem:[#allocation5 + $0xe8] sm:$0xff]  ;;  %v128_v28 = vld [vmem:[#allocation5 + $0x218] sm:$0xff]  ;;  %v153_v30 = vld [vmem:[#allocation5 + $0x2e0] sm:$0xff] }
  0x2e   :  { %268 = vmatpush.msra.mxu2 %v157_v56  ;;  %229 = vmatmul.f32.vlgmr.msra.gmra.mxu0 %v700_v60  ;;  %v87_v31 = vld [vmem:[#allocation5 + $0xd0] sm:$0xff]  ;;  %v125_v32 = vld [vmem:[#allocation5 + $0x200] sm:$0xff]  ;;  %v176_v33 = vld [vmem:[#allocation5 + $0x398] sm:$0xff] }
  0x2f   :  { %269 = vmatmul.f32.vlgmr.msra.gmra.mxu2 %v698_v57  ;;  %293 = vmatpush.msrb.mxu0 %v155_v58  ;;  %v150_v34 = vld [vmem:[#allocation5 + $0x2c8] sm:$0xff]  ;;  %v84_v35 = vld [vmem:[#allocation5 + $0xb8] sm:$0xff]  ;;  %v173_v37 = vld [vmem:[#allocation5 + $0x380] sm:$0xff] }
  0x30   :  { %248 = vmatpush.msra.mxu1 %v109_v59  ;;  %333 = vmatpush.msrb.mxu2 %v108_v4  ;;  %v122_v36 = vld [vmem:[#allocation5 + $0x1e8] sm:$0xff]  ;;  %v147_v38 = vld [vmem:[#allocation5 + $0x2b0] sm:$0xff]  ;;  %v81_v39 = vld [vmem:[#allocation5 + $0xa0] sm:$0xff] }
  0x31   :  { %294 = vmatpush.msrb.mxu0 %v152_v61  ;;  %249 = vmatmul.f32.vlgmr.msra.gmra.mxu1 %v703_v63  ;;  %v119_v40 = vld [vmem:[#allocation5 + $0x1d0] sm:$0xff]  ;;  %v170_v41 = vld [vmem:[#allocation5 + $0x368] sm:$0xff]  ;;  %v144_v42 = vld [vmem:[#allocation5 + $0x298] sm:$0xff] }
  0x32   :  { %313 = vmatpush.msrb.mxu1 %v203_v62  ;;  %285 = vmatpush.msra.mxu3 %v71_v7  ;;  %v78_v43 = vld [vmem:[#allocation5 + $0x88] sm:$0xff]  ;;  %v116_v44 = vld [vmem:[#allocation5 + $0x1b8] sm:$0xff]  ;;  %v167_v45 = vld [vmem:[#allocation5 + $0x350] sm:$0xff] }
  0x33   :  { %295 = vmatpush.msrb.mxu0 %v149_v1  ;;  %334 = vmatpush.msrb.mxu2 %v105_v8  ;;  %v141_v46 = vld [vmem:[#allocation5 + $0x280] sm:$0xff]  ;;  %v75_v47 = vld [vmem:[#allocation5 + $0x70] sm:$0xff]  ;;  %v164_v49 = vld [vmem:[#allocation5 + $0x338] sm:$0xff] }
  0x34   :  { %314 = vmatpush.msrb.mxu1 %v200_v2  ;;  %286 = vmatpush.msra.mxu3 %v68_v11  ;;  %v113_v48 = vld [vmem:[#allocation5 + $0x1a0] sm:$0xff]  ;;  %v138_v50 = vld [vmem:[#allocation5 + $0x268] sm:$0xff]  ;;  %v72_v51 = vld [vmem:[#allocation5 + $0x58] sm:$0xff] }
  0x35   :  { %296 = vmatpush.msrb.mxu0 %v146_v5  ;;  %335 = vmatpush.msrb.mxu2 %v102_v12  ;;  %v110_v52 = vld [vmem:[#allocation5 + $0x188] sm:$0xff]  ;;  %v161_v53 = vld [vmem:[#allocation5 + $0x320] sm:$0xff]  ;;  %v135_v54 = vld [vmem:[#allocation5 + $0x250] sm:$0xff] }
  0x36   :  { %315 = vmatpush.msrb.mxu1 %v197_v6  ;;  %287 = vmatpush.msra.mxu3 %v65_v15  ;;  %v204_v55 = vld [vmem:[#allocation5 + $0x478] sm:$0xff]  ;;  %v158_v56 = vld [vmem:[#allocation5 + $0x308] sm:$0xff]  ;;  %v201_v59 = vld [vmem:[#allocation5 + $0x460] sm:$0xff] }
  0x37   :  { %297 = vmatpush.msrb.mxu0 %v143_v9  ;;  %336 = vmatpush.msrb.mxu2 %v99_v16  ;;  %v132_v58 = vld [vmem:[#allocation5 + $0x238] sm:$0xff]  ;;  %v69_v61 = vld [vmem:[#allocation5 + $0x40] sm:$0xff]  ;;  %v198_v0 = vld [vmem:[#allocation5 + $0x448] sm:$0xff] }
  0x38   :  { %316 = vmatpush.msrb.mxu1 %v194_v10  ;;  %288 = vmatpush.msra.mxu3 %v62_v19  ;;  %v129_v62 = vld [vmem:[#allocation5 + $0x220] sm:$0xff]  ;;  %v66_v1 = vld [vmem:[#allocation5 + $0x28] sm:$0xff]  ;;  %v195_v3 = vld [vmem:[#allocation5 + $0x430] sm:$0xff] }
  0x39   :  { %298 = vmatpush.msrb.mxu0 %v140_v13  ;;  %337 = vmatpush.msrb.mxu2 %v96_v20  ;;  %v126_v2 = vld [vmem:[#allocation5 + $0x208] sm:$0xff]  ;;  %v63_v4 = vld [vmem:[#allocation5 + $0x10] sm:$0xff]  ;;  %v192_v6 = vld [vmem:[#allocation5 + $0x418] sm:$0xff] }
  0x3a   :  { %317 = vmatpush.msrb.mxu1 %v191_v14  ;;  %289 = vmatmul.f32.vlgmr.msra.gmra.mxu3 %v700_v60  ;;  %v123_v5 = vld [vmem:[#allocation5 + $0x1f0] sm:$0xff]  ;;  %v120_v7 = vld [vmem:[#allocation5 + $0x1d8] sm:$0xff]  ;;  %v189_v8 = vld [vmem:[#allocation5 + $0x400] sm:$0xff] }
  0x3b   :  { %299 = vmatpush.msrb.mxu0 %v137_v17  ;;  %338 = vmatpush.msrb.mxu2 %v93_v23  ;;  %v117_v9 = vld [vmem:[#allocation5 + $0x1c0] sm:$0xff]  ;;  %v186_v10 = vld [vmem:[#allocation5 + $0x3e8] sm:$0xff]  ;;  %v183_v12 = vld [vmem:[#allocation5 + $0x3d0] sm:$0xff] }
  0x3c   :  { %318 = vmatpush.msrb.mxu1 %v188_v18  ;;  %353 = vmatpush.msrb.mxu3 %v156_v26  ;;  %v114_v11 = vld [vmem:[#allocation5 + $0x1a8] sm:$0xff]  ;;  %v111_v13 = vld [vmem:[#allocation5 + $0x190] sm:$0xff]  ;;  %v180_v14 = vld [vmem:[#allocation5 + $0x3b8] sm:$0xff] }
  0x3d   :  { %300 = vmatpush.msrb.mxu0 %v134_v21  ;;  %339 = vmatpush.msrb.mxu2 %v90_v27  ;;  %v177_v15 = vld [vmem:[#allocation5 + $0x3a0] sm:$0xff]  ;;  %v174_v16 = vld [vmem:[#allocation5 + $0x388] sm:$0xff]  ;;  %v168_v17 = vld [vmem:[#allocation5 + $0x358] sm:$0xff] }
  0x3e   :  { %319 = vmatpush.msrb.mxu1 %v185_v22  ;;  %354 = vmatpush.msrb.mxu3 %v153_v30  ;;  %v165_v18 = vld [vmem:[#allocation5 + $0x340] sm:$0xff]  ;;  %v162_v19 = vld [vmem:[#allocation5 + $0x328] sm:$0xff]  ;;  %v159_v20 = vld [vmem:[#allocation5 + $0x310] sm:$0xff] }
  0x3f   :  { %301 = vmatpush.msrb.mxu0 %v131_v24  ;;  %340 = vmatpush.msrb.mxu2 %v87_v31  ;;  %v713_v21 = vld [vmem:[#allocation7] sm:$0x7] }
  0x40   :  { %320 = vmatpush.msrb.mxu1 %v182_v25  ;;  %355 = vmatpush.msrb.mxu3 %v150_v34  ;;  %v207_v22 = vperm.slane %v713_v21, 0 }
  0x41   :  { %302 = vmatpush.msrb.mxu0 %v128_v28  ;;  %341 = vmatpush.msrb.mxu2 %v84_v35 }
  0x42   :  { %321 = vmatpush.msrb.mxu1 %v179_v29  ;;  %356 = vmatpush.msrb.mxu3 %v147_v38 }
  0x43   :  { %303 = vmatpush.msrb.mxu0 %v125_v32  ;;  %342 = vmatpush.msrb.mxu2 %v81_v39  ;;  %v208_v39 = vperm.slane %v713_v21, 1 }
  0x44   :  { %322 = vmatpush.msrb.mxu1 %v176_v33  ;;  %357 = vmatpush.msrb.mxu3 %v144_v42 }
  0x45   :  { %304 = vmatpush.msrb.mxu0 %v122_v36  ;;  %343 = vmatpush.msrb.mxu2 %v78_v43 }
  0x46   :  { %323 = vmatpush.msrb.mxu1 %v173_v37  ;;  %358 = vmatpush.msrb.mxu3 %v141_v46 }
  0x47   :  { %305 = vmatpush.msrb.mxu0 %v119_v40  ;;  %344 = vmatpush.msrb.mxu2 %v75_v47 }
  0x48   :  { %324 = vmatpush.msrb.mxu1 %v170_v41  ;;  %359 = vmatpush.msrb.mxu3 %v138_v50 }
  0x49   :  { %306 = vmatpush.msrb.mxu0 %v116_v44  ;;  %345 = vmatpush.msrb.mxu2 %v72_v51 }
  0x4a   :  { %325 = vmatpush.msrb.mxu1 %v167_v45  ;;  %360 = vmatpush.msrb.mxu3 %v135_v54 }
  0x4b   :  { %307 = vmatpush.msrb.mxu0 %v113_v48  ;;  %346 = vmatpush.msrb.mxu2 %v69_v61 }
  0x4c   :  { %326 = vmatpush.msrb.mxu1 %v164_v49  ;;  %361 = vmatpush.msrb.mxu3 %v132_v58 }
  0x4d   :  { %308 = vmatpush.msrb.mxu0 %v110_v52  ;;  %347 = vmatpush.msrb.mxu2 %v66_v1 }
  0x4e   :  { %327 = vmatpush.msrb.mxu1 %v161_v53  ;;  %309 = vmatmul.f32.vlgmr.msrb.gmra.mxu0 %v703_v63 }
  0x4f   :  { %373 = vmatpush.msra.mxu0 %v204_v55  ;;  %362 = vmatpush.msrb.mxu3 %v129_v62 }
  0x50   :  { %328 = vmatpush.msrb.mxu1 %v158_v56  ;;  %348 = vmatpush.msrb.mxu2 %v63_v4 }
  0x51   :  { %329 = vmatmul.f32.vlgmr.msrb.gmra.mxu1 %v698_v57  ;;  %374 = vmatpush.msra.mxu0 %v201_v59 }
  0x52   :  { %363 = vmatpush.msrb.mxu3 %v126_v2  ;;  %349 = vmatmul.f32.vlgmr.msrb.gmra.mxu2 %v700_v60  ;;  %v171_v60 = vld [vmem:[#allocation5 + $0x370] sm:$0xff] }
  0x53   :  { %375 = vmatpush.msra.mxu0 %v198_v0 }
  0x54   :  { %364 = vmatpush.msrb.mxu3 %v123_v5 }
  0x55   :  { %376 = vmatpush.msra.mxu0 %v195_v3 }
  0x56   :  { %365 = vmatpush.msrb.mxu3 %v120_v7 }
  0x57   :  { %377 = vmatpush.msra.mxu0 %v192_v6 }
  0x58   :  { %366 = vmatpush.msrb.mxu3 %v117_v9 }
  0x59   :  { %378 = vmatpush.msra.mxu0 %v189_v8 }
  0x5a   :  { %367 = vmatpush.msrb.mxu3 %v114_v11 }
  0x5b   :  { %379 = vmatpush.msra.mxu0 %v186_v10 }
  0x5c   :  { %368 = vmatpush.msrb.mxu3 %v111_v13 }
  0x5d   :  { %380 = vmatpush.msra.mxu0 %v183_v12  ;;  %369 = vmatmul.f32.vlgmr.msrb.gmra.mxu3 %v703_v63 }
  0x5f   :  { %381 = vmatpush.msra.mxu0 %v180_v14 }
  0x61   :  { %382 = vmatpush.msra.mxu0 %v177_v15 }
  0x63   :  { %383 = vmatpush.msra.mxu0 %v174_v16 }
  0x65   :  { %384 = vmatpush.msra.mxu0 %v171_v60 }
  0x67   :  { %385 = vmatpush.msra.mxu0 %v168_v17 }
  0x69   :  { %386 = vmatpush.msra.mxu0 %v165_v18 }
  0x6b   :  { %387 = vmatpush.msra.mxu0 %v162_v19 }
  0x6d   :  { %388 = vmatpush.msra.mxu0 %v159_v20 }
  0x6e   :  { %389 = vmatmul.f32.vlgmr.msra.gmra.mxu0 %v698_v57 }
  0xab   :  { %v230_v63 = vpop.f32.mrf.mxu0 }
  0xac   :  { %v231_v23 = vadd.f32 %v230_v63, %v207_v22  ;;  %v209_v22 = vperm.slane %v713_v21, 2 }
  0xae   :  { %v250_v24 = vpop.f32.mrf.mxu1 }
  0xaf   :  { %v251_v25 = vadd.f32 %v250_v24, %v231_v23 }
  0xb2   :  { %v270_v26 = vpop.f32.mrf.mxu2 }
  0xb3   :  { %v716_v27 = vadd.f32 %v270_v26, %v251_v25 }
  0xb5   :  { %v396_v28 = vmul.f32 0.70710677, %v716_v27  ;;  %v393_v26 = vmul.f32 0.5, %v716_v27 }
  0xb7   :  { %v399_v29 = vmul.f32 %v396_v28, %v396_v28 }
  0xb9   :  { %v400_v30 = vmin.f32 %v399_v29, 16.0 }
  0xbb   :  { %v401_v31 = vmul.f32 2.1237322e-06, %v400_v30  ;;  %v412_v32 = vmul.f32 3.8918573e-05, %v400_v30 }
  0xbd   :  { %v402_v33 = vadd.f32 0.00028619796, %v401_v31  ;;  %v413_v34 = vadd.f32 0.001143296, %v412_v32  ;;  %v290_v41 = vpop.f32.mrf.mxu3 }
  0xbe   :  { %v291_v44 = vadd.f32 %v290_v41, %v208_v39 }
  0xbf   :  { %v403_v57 = vmul.f32 %v402_v33, %v400_v30  ;;  %v414_v35 = vmul.f32 %v413_v34, %v400_v30 }
  0xc1   :  { %v415_v36 = vadd.f32 0.014752088, %v414_v35  ;;  %v404_v37 = vadd.f32 0.0036580483, %v403_v57 }
  0xc3   :  { %v416_v38 = vmul.f32 %v415_v36, %v400_v30  ;;  %v405_v42 = vmul.f32 %v404_v37, %v400_v30 }
  0xc5   :  { %v417_v40 = vadd.f32 0.112945676, %v416_v38  ;;  %v406_v46 = vadd.f32 0.05243302, %v405_v42 }
  0xc7   :  { %v418_v43 = vmul.f32 %v417_v40, %v400_v30  ;;  %v407_v52 = vmul.f32 %v406_v46, %v400_v30 }
  0xc9   :  { %v419_v45 = vadd.f32 0.4994258, %v418_v43  ;;  %v408_v55 = vadd.f32 0.18741608, %v407_v52 }
  0xcb   :  { %v420_v47 = vmul.f32 %v419_v45, %v400_v30  ;;  %v310_v48 = vpop.f32.mrf.mxu0  ;;  %v409_v61 = vmul.f32 %v408_v55, %v400_v30 }
  0xcc   :  { %v311_v49 = vadd.f32 %v310_v48, %v291_v44 }
  0xcd   :  { %v421_v50 = vadd.f32 1.0, %v420_v47  ;;  %v410_v7 = vadd.f32 1.1283791, %v409_v61 }
  0xce   :  { %v330_v51 = vpop.f32.mrf.mxu1 }
  0xcf   :  { %v720_v53 = vadd.f32 %v330_v51, %v311_v49  ;;  %555 = vrcp.f32 %v421_v50  ;;  %vm427_vm0 = vweird.f32 %v421_v50  ;;  %v431_v2 = vand.u32 2147483647, %v421_v50 }
  0xd0   :  { %v433_v3 = vand.u32 2147483648, %v421_v50  ;;  %v411_v15 = vmul.f32 %v410_v7, %v396_v28 }
  0xd1   :  { %v723_v54 = vmul.f32 0.70710677, %v720_v53  ;;  %vm432_vm3 = vcmp.eq.f32.partialorder %v431_v2, 8.507059e+37 }
  0xd2   :  { %v434_v11 = vor.u32 1.1754944e-38, %v433_v3 }
  0xd3   :  { %v439_v56 = vmul.f32 %v723_v54, %v723_v54 }
  0xd5   :  { %v440_v58 = vmin.f32 %v439_v56, 16.0  ;;  %v556_v59 = vpop.eup %555  ;;  %v350_v63 = vpop.f32.mrf.mxu2 }
  0xd6   :  { %v423_v62 = vmul.f32 %v556_v59, %v421_v50  ;;  %vm428_vm1 = vweird.f32 %v556_v59  ;;  %v351_v31 = vadd.f32 %v350_v63, %v209_v22 }
  0xd7   :  { %v441_v0 = vmul.f32 2.1237322e-06, %v440_v58  ;;  %v452_v1 = vmul.f32 3.8918573e-05, %v440_v58  ;;  %vm429_vm2 = vmor %vm427_vm0, %vm428_vm1 }
  0xd8   :  { %v424_v4 = vsub.f32 1.0, %v423_v62 }
  0xd9   :  { %v442_v5 = vadd.f32 0.00028619796, %v441_v0  ;;  %v453_v6 = vadd.f32 0.001143296, %v452_v1 }
  0xda   :  { %v425_v8 = vmul.f32 %v556_v59, %v424_v4 }
  0xdb   :  { %v443_v9 = vmul.f32 %v442_v5, %v440_v58  ;;  %v454_v10 = vmul.f32 %v453_v6, %v440_v58  ;;  %v394_v6 = vmul.f32 0.5, %v720_v53 }
  0xdc   :  { %v426_v12 = vadd.f32 %v556_v59, %v425_v8 }
  0xdd   :  { %v444_v13 = vadd.f32 0.0036580483, %v443_v9  ;;  %v455_v14 = vadd.f32 0.014752088, %v454_v10 }
  0xde   :  { %v430_v16 = vsel %vm429_vm2, %v556_v59, %v426_v12 }
  0xdf   :  { %v456_v60 = vmul.f32 %v455_v14, %v440_v58  ;;  %v435_v17 = vsel %vm432_vm3, %v434_v11, %v430_v16  ;;  %v445_v18 = vmul.f32 %v444_v13, %v440_v58 }
  0xe0   :  { %v436_v19 = vmul.f32 %v435_v17, %v411_v15  ;;  %v370_v32 = vpop.f32.mrf.mxu3 }
  0xe1   :  { %v457_v20 = vadd.f32 0.112945676, %v456_v60  ;;  %v446_v25 = vadd.f32 0.05243302, %v445_v18  ;;  %v371_v35 = vadd.f32 %v370_v32, %v351_v31 }
  0xe2   :  { %v546_v23 = vclamps-f32 %v436_v19, 1.0 }
  0xe3   :  { %v458_v24 = vmul.f32 %v457_v20, %v440_v58  ;;  %v447_v34 = vmul.f32 %v446_v25, %v440_v58 }
  0xe4   :  { %v519_v29 = vadd.f32 1.0, %v546_v23 }
  0xe5   :  { %v459_v30 = vadd.f32 0.4994258, %v458_v24  ;;  %v448_v36 = vadd.f32 0.18741608, %v447_v34 }
  0xe6   :  { %v522_v33 = vmul.f32 %v519_v29, %v393_v26 }
  0xe7   :  { %v460_v28 = vmul.f32 %v459_v30, %v440_v58  ;;  %v449_v39 = vmul.f32 %v448_v36, %v440_v58 }
  0xe8   :  { %525 = vst [vmem:[#allocation8] sm:$0xff] %v522_v33 }
  0xe9   :  { %v461_v57 = vadd.f32 1.0, %v460_v28  ;;  %v450_v43 = vadd.f32 1.1283791, %v449_v39 }
  0xeb   :  { %557 = vrcp.f32 %v461_v57  ;;  %v390_v37 = vpop.f32.mrf.mxu0  ;;  %v473_v45 = vand.u32 2147483648, %v461_v57  ;;  %vm467_vm4 = vweird.f32 %v461_v57  ;;  %v471_v49 = vand.u32 2147483647, %v461_v57 }
  0xec   :  { %v729_v21 = vadd.f32 %v390_v37, %v371_v35  ;;  %v451_v59 = vmul.f32 %v450_v43, %v723_v54 }
  0xed   :  { %v474_v55 = vor.u32 1.1754944e-38, %v473_v45  ;;  %vm472_vm7 = vcmp.eq.f32.partialorder %v471_v49, 8.507059e+37 }
  0xee   :  { %v398_v38 = vmul.f32 0.70710677, %v729_v21  ;;  %v395_v31 = vmul.f32 0.5, %v729_v21 }
  0xf0   :  { %v479_v27 = vmul.f32 %v398_v38, %v398_v38 }
  0xf1   :  { %v558_v40 = vpop.eup %557 }
  0xf2   :  { %v463_v41 = vmul.f32 %v558_v40, %v461_v57  ;;  %v480_v42 = vmin.f32 %v479_v27, 16.0  ;;  %vm468_vm5 = vweird.f32 %v558_v40 }
  0xf3   :  { %vm469_vm6 = vmor %vm467_vm4, %vm468_vm5 }
  0xf4   :  { %v464_v44 = vsub.f32 1.0, %v463_v41  ;;  %v481_v46 = vmul.f32 2.1237322e-06, %v480_v42  ;;  %v492_v47 = vmul.f32 3.8918573e-05, %v480_v42 }
  0xf6   :  { %v465_v48 = vmul.f32 %v558_v40, %v464_v44  ;;  %v482_v50 = vadd.f32 0.00028619796, %v481_v46  ;;  %v493_v51 = vadd.f32 0.001143296, %v492_v47 }
  0xf8   :  { %v466_v52 = vadd.f32 %v558_v40, %v465_v48  ;;  %v483_v56 = vmul.f32 %v482_v50, %v480_v42  ;;  %v494_v58 = vmul.f32 %v493_v51, %v480_v42 }
  0xfa   :  { %v470_v61 = vsel %vm469_vm6, %v558_v40, %v466_v52  ;;  %v495_v0 = vadd.f32 0.014752088, %v494_v58  ;;  %v484_v2 = vadd.f32 0.0036580483, %v483_v56 }
  0xfb   :  { %v475_v62 = vsel %vm472_vm7, %v474_v55, %v470_v61 }
  0xfc   :  { %v476_v1 = vmul.f32 %v475_v62, %v451_v59  ;;  %v496_v3 = vmul.f32 %v495_v0, %v480_v42  ;;  %v485_v8 = vmul.f32 %v484_v2, %v480_v42 }
  0xfe   :  { %v547_v4 = vclamps-f32 %v476_v1, 1.0  ;;  %v497_v5 = vadd.f32 0.112945676, %v496_v3  ;;  %v486_v12 = vadd.f32 0.05243302, %v485_v8 }
 0x100   :  { %v520_v7 = vadd.f32 1.0, %v547_v4  ;;  %v498_v9 = vmul.f32 %v497_v5, %v480_v42  ;;  %v487_v14 = vmul.f32 %v486_v12, %v480_v42 }
 0x102   :  { %v523_v10 = vmul.f32 %v520_v7, %v394_v6  ;;  %v499_v11 = vadd.f32 0.4994258, %v498_v9  ;;  %v488_v15 = vadd.f32 0.18741608, %v487_v14 }
 0x104   :  { %526 = vst [vmem:[#allocation8 + $0x8] sm:$0xff] %v523_v10  ;;  %v500_v13 = vmul.f32 %v499_v11, %v480_v42  ;;  %v489_v60 = vmul.f32 %v488_v15, %v480_v42 }
 0x106   :  { %v501_v54 = vadd.f32 1.0, %v500_v13  ;;  %v490_v20 = vadd.f32 1.1283791, %v489_v60 }
 0x108   :  { %559 = vrcp.f32 %v501_v54  ;;  %v513_v19 = vand.u32 2147483648, %v501_v54  ;;  %v511_v53 = vand.u32 2147483647, %v501_v54  ;;  %vm507_vm9 = vweird.f32 %v501_v54 }
 0x109   :  { %v491_v24 = vmul.f32 %v490_v20, %v398_v38 }
 0x10a   :  { %v514_v23 = vor.u32 1.1754944e-38, %v513_v19  ;;  %vm512_vm11 = vcmp.eq.f32.partialorder %v511_v53, 8.507059e+37 }
 0x10e   :  { %v560_v16 = vpop.eup %559 }
 0x10f   :  { %v503_v17 = vmul.f32 %v560_v16, %v501_v54  ;;  %vm508_vm8 = vweird.f32 %v560_v16 }
 0x110   :  { %vm509_vm10 = vmor %vm507_vm9, %vm508_vm8 }
 0x111   :  { %v504_v18 = vsub.f32 1.0, %v503_v17 }
 0x113   :  { %v505_v22 = vmul.f32 %v560_v16, %v504_v18 }
 0x115   :  { %v506_v63 = vadd.f32 %v560_v16, %v505_v22 }
 0x117   :  { %v510_v25 = vsel %vm509_vm10, %v560_v16, %v506_v63 }
 0x118   :  { %v515_v26 = vsel %vm512_vm11, %v514_v23, %v510_v25 }
 0x119   :  { %v516_v29 = vmul.f32 %v515_v26, %v491_v24 }
 0x11b   :  { %v548_v30 = vclamps-f32 %v516_v29, 1.0 }
 0x11d   :  { %v521_v32 = vadd.f32 1.0, %v548_v30 }
 0x11f   :  { %v524_v33 = vmul.f32 %v521_v32, %v395_v31 }
 0x121   :  { %527 = vst [vmem:[#allocation8 + $0x10] sm:$0xff] %v524_v33 }
 0x122   :  { %538 = dma.vmem_to_hbm [thread:$0]  %s534_s2, 384, %s536_s30, [#allocation4]  }
 0x123   :  { %661 = dma.done.wait [#allocation4], 384  }
 0x124   :  { %662 = vsyncadd [#allocation4], 4294966912 }
 0x125   :  { %543 = vsyncpa [#allocation3], 1 }
 0x126   :  { %544 = vsyncpa [#allocation6], 1 }
 0x127   :  { %545 = vsyncpa [#allocation4], 1 }

</bundles_post_ra>
